<compile_context>
chip_gen: v7x
topology: tpu7x:2x2x1
jax: 0.10.0
libtpu: 0.0.40
codegen_flags: <defaults>
</compile_context>

<pallas_src>
from functools import partial

import jax
import jax.numpy as jnp
from jax.experimental import pallas as pl
from jax.experimental.pallas import tpu as pltpu


def _patch_embed_kernel(patches_ref, wt_ref, posb_ref, out_ref):
    # patches_ref: (1, TN, K)   patch rows for one (batch, N-tile)
    # wt_ref:      (K, TE)      reshaped+transposed Conv2d weight tile
    # posb_ref:    (TN, TE)     pos_embedding[1:] + bias tile (f32)
    # out_ref:     (1, TN, TE)
    proj = jnp.dot(patches_ref[0], wt_ref[...],
                   preferred_element_type=jnp.float32)      # (TN, TE) f32 acc
    out_ref[0] = (proj + posb_ref[...]).astype(out_ref.dtype)


def _pick_tile(dim: int, target: int, align: int) -> int:
    """Largest divisor of `dim` that is a multiple of `align` and <= target.

    Falls back to the full dim (always a legal block shape) if no aligned
    divisor exists."""
    if dim <= target:
        return dim
    if dim % align != 0:
        return dim
    cand = (target // align) * align
    while cand >= align:
        if dim % cand == 0:
            return cand
        cand -= align
    return dim


@partial(jax.jit, static_argnames=("patch_size", "compute_dtype"))
def patch_embedding_forward(x, weight, bias, cls_token, pos_embedding,
                            patch_size, compute_dtype=None):
    """x: (B, C, H, W) NCHW, weight: (E, C, p, p), bias: (E,),
    cls_token: (1, 1, E), pos_embedding: (1, N+1, E).  Returns (B, N+1, E)."""
    B, C, H, W = x.shape
    E = weight.shape[0]
    p = patch_size
    nh, nw = H // p, W // p
    N = nh * nw
    K = C * p * p

    # --- glue: patch extraction (reshape/transpose, fused by XLA under jit) --
    # (B, C, nh, p, nw, p) -> (B, nh, nw, C, p, p) -> (B, N, C*p*p)
    patches = x.reshape(B, C, nh, p, nw, p)
    patches = patches.transpose(0, 2, 4, 1, 3, 5).reshape(B, N, K)

    wt = weight.reshape(E, K).T                                   # (K, E)
    # Fold bias into the patch-row positional embedding (drops one operand).
    posb = (pos_embedding[0, 1:, :] + bias[None, :]).astype(jnp.float32)  # (N, E)

    if compute_dtype is not None:
        patches = patches.astype(compute_dtype)
        wt = wt.astype(compute_dtype)

    # --- tiling: lane-dense, (8,128)-aligned where the shapes allow ---------
    TN = _pick_tile(N, 512, 8)      # sublane dim of the output tile
    TE = _pick_tile(E, 512, 128)    # lane dim of the output tile
    num_n = N // TN
    num_e = E // TE

    cost = pl.CostEstimate(
        flops=2 * B * N * K * E,
        transcendentals=0,
        bytes_accessed=(patches.size * patches.dtype.itemsize
                        + wt.size * wt.dtype.itemsize
                        + posb.size * posb.dtype.itemsize
                        + B * N * E * jnp.dtype(x.dtype).itemsize),
    )

    # --- Pallas kernel: tiled projection matmul + fused (pos + bias) add ----
    out_patches = pl.pallas_call(
        _patch_embed_kernel,
        out_shape=jax.ShapeDtypeStruct((B, N, E), x.dtype),
        grid_spec=pltpu.PrefetchScalarGridSpec(
            num_scalar_prefetch=0,
            # E outermost: the weight tile is reused across the whole inner
            # (B, N) sweep without re-DMA.
            grid=(num_e, B, num_n),
            in_specs=[
                pl.BlockSpec((1, TN, K), lambda e, b, n: (b, n, 0)),
                pl.BlockSpec((K, TE), lambda e, b, n: (0, e)),
                pl.BlockSpec((TN, TE), lambda e, b, n: (n, e)),
            ],
            out_specs=pl.BlockSpec((1, TN, TE), lambda e, b, n: (b, n, e)),
        ),
        compiler_params=pltpu.CompilerParams(
            dimension_semantics=("parallel", "parallel", "parallel"),
            vmem_limit_bytes=48 * 1024 * 1024,
        ),
        cost_estimate=cost,
    )(patches, wt, posb)

    # --- glue: cls token row + concat ----------------------------------------
    cls_row = (cls_token[0, 0, :] + pos_embedding[0, 0, :]).astype(x.dtype)  # (E,)
    cls_row = jnp.broadcast_to(cls_row[None, None, :], (B, 1, E))
    return jnp.concatenate([cls_row, out_patches], axis=1)        # (B, N+1, E)


def _reference_forward(x, weight, bias, cls_token, pos_embedding, patch_size):
    """Pure-JAX reference mirroring the PyTorch module (for self-check)."""
    y = jax.lax.conv_general_dilated(
        x, weight,
        window_strides=(patch_size, patch_size), padding="VALID",
        dimension_numbers=("NCHW", "OIHW", "NCHW"),
        precision=jax.lax.Precision.HIGHEST)
    y = y + bias[None, :, None, None]
    B, E, nh, nw = y.shape
    y = y.reshape(B, E, nh * nw).transpose(0, 2, 1)               # (B, N, E)
    cls = jnp.broadcast_to(cls_token, (B, 1, E))
    y = jnp.concatenate([cls, y], axis=1)
    return y + pos_embedding


if __name__ == "__main__":
    # Small shapes consistent with the module: image 16x16, patch 8,
    # 4 input channels, embed_dim 32 -> num_patches = 4.
    B, C, HW, P, E = 2, 4, 16, 8, 32
    N = (HW // P) ** 2

    key = jax.random.PRNGKey(0)
    k_x, k_w, k_b, k_cls, k_pos = jax.random.split(key, 5)

    x = jax.random.normal(k_x, (B, C, HW, HW), dtype=jnp.float32)
    weight = jax.random.normal(k_w, (E, C, P, P), dtype=jnp.float32) * 0.02
    bias = jax.random.normal(k_b, (E,), dtype=jnp.float32) * 0.02
    cls_token = jax.random.normal(k_cls, (1, 1, E), dtype=jnp.float32)
    pos_embedding = jax.random.normal(k_pos, (1, N + 1, E), dtype=jnp.float32)

    ref = _reference_forward(x, weight, bias, cls_token, pos_embedding, P)

    # f32 compute path (tolerance allows for MXU multi-pass f32 matmul).
    out = patch_embedding_forward(x, weight, bias, cls_token, pos_embedding, P)
    out = jax.block_until_ready(out)
    assert out.shape == (B, N + 1, E), out.shape
    assert jnp.allclose(out, ref, atol=1e-2, rtol=1e-2), "f32 mismatch vs reference"

    # bf16 compute path (MXU-native feed, f32 accumulate) -- looser tolerance.
    out_bf16 = patch_embedding_forward(x, weight, bias, cls_token, pos_embedding,
                                       P, compute_dtype=jnp.bfloat16)
    out_bf16 = jax.block_until_ready(out_bf16)
    assert out_bf16.shape == (B, N + 1, E), out_bf16.shape
    assert jnp.allclose(out_bf16, ref, atol=1e-1, rtol=1e-1), "bf16 mismatch vs reference"

    print("KERNEL_OK")
</pallas_src>

<mosaic_0001>
module attributes {stable_mosaic.version = 11 : i64} {
  func.func @_patch_embed_kernel(%arg0: i32, %arg1: i32, %arg2: i32, %arg3: memref<1x4x256xf32, #tpu.memory_space<vmem>>, %arg4: memref<256x32xf32, #tpu.memory_space<vmem>>, %arg5: memref<4x32xf32, #tpu.memory_space<vmem>>, %arg6: memref<1x4x32xf32, #tpu.memory_space<vmem>>) attributes {dimension_semantics = [#tpu.dimension_semantics<parallel>, #tpu.dimension_semantics<parallel>, #tpu.dimension_semantics<parallel>], iteration_bounds = array<i64: 1, 2, 1>, scalar_prefetch = 0 : i64, scratch_operands = 0 : i64, tpu.core_type = #tpu.core_type<tc>, window_params = [{transform_indices = @transform_0, window_bounds = array<i64: 1, 4, 256>}, {transform_indices = @transform_1, window_bounds = array<i64: 256, 32>}, {transform_indices = @transform_2, window_bounds = array<i64: 4, 32>}, {transform_indices = @transform_3, window_bounds = array<i64: 1, 4, 32>}]} {
    %c0 = arith.constant 0 : index
    %c0_0 = arith.constant 0 : index
    %c0_1 = arith.constant 0 : index
    %0 = vector.load %arg3[%c0, %c0_0, %c0_1] : memref<1x4x256xf32, #tpu.memory_space<vmem>>, vector<1x4x256xf32>
    %1 = vector.shape_cast %0 : vector<1x4x256xf32> to vector<4x256xf32>
    %c0_2 = arith.constant 0 : index
    %c0_3 = arith.constant 0 : index
    %2 = vector.load %arg4[%c0_2, %c0_3] : memref<256x32xf32, #tpu.memory_space<vmem>>, vector<256x32xf32>
    %cst = arith.constant dense<0.000000e+00> : vector<4x32xf32>
    %3 = tpu.matmul %1, %2, %cst {dimension_numbers = #tpu.dot_dimension_numbers<[1], [0], [0], [1], [0, 0, 1, 1], [], []>} : vector<4x256xf32>, vector<256x32xf32>, vector<4x32xf32> -> vector<4x32xf32>
    %c0_4 = arith.constant 0 : index
    %c0_5 = arith.constant 0 : index
    %4 = vector.load %arg5[%c0_4, %c0_5] : memref<4x32xf32, #tpu.memory_space<vmem>>, vector<4x32xf32>
    %5 = arith.addf %3, %4 : vector<4x32xf32>
    %c0_6 = arith.constant 0 : index
    %c0_7 = arith.constant 0 : index
    %c0_8 = arith.constant 0 : index
    %6 = vector.load %arg6[%c0_6, %c0_7, %c0_8] : memref<1x4x32xf32, #tpu.memory_space<vmem>>, vector<1x4x32xf32>
    %7 = vector.shape_cast %6 : vector<1x4x32xf32> to vector<4x32xf32>
    %8 = vector.shape_cast %5 : vector<4x32xf32> to vector<1x4x32xf32>
    tpu.vector_store %arg6[%c0_6, %c0_7, %c0_8], %8 {strides = array<i32>} : memref<1x4x32xf32, #tpu.memory_space<vmem>>, vector<1x4x32xf32>,
    return
  }
  func.func @transform_0(%arg0: i32, %arg1: i32, %arg2: i32) -> (i32, i32, i32) {
    %c0_i32 = arith.constant 0 : i32
    %c0_i32_0 = arith.constant 0 : i32
    return %arg1, %arg2, %c0_i32 : i32, i32, i32
  }
  func.func @transform_1(%arg0: i32, %arg1: i32, %arg2: i32) -> (i32, i32) {
    %c0_i32 = arith.constant 0 : i32
    %c0_i32_0 = arith.constant 0 : i32
    return %c0_i32, %arg0 : i32, i32
  }
  func.func @transform_2(%arg0: i32, %arg1: i32, %arg2: i32) -> (i32, i32) {
    %c0_i32 = arith.constant 0 : i32
    return %arg2, %arg0 : i32, i32
  }
  func.func @transform_3(%arg0: i32, %arg1: i32, %arg2: i32) -> (i32, i32, i32) {
    %c0_i32 = arith.constant 0 : i32
    return %arg1, %arg2, %arg0 : i32, i32, i32
  }
}

</mosaic_0001>

<bundles_post_ra>
// kernel: patch_embedding_forward.1
= control target key start
LH: loop header
LB: loop body
LE: loop exit
PB: predicated region body
PF: predicated region fallthrough
CT: control target
= control target key end

     0   :  { %s648_s12 = smov 0   ;;  %s650_s13 = smov 0   ;;  %s784_s0 = inlined_call_operand.vmem [shape: f32[2,4,256], index: 0, kind: input, shape index: {}]   ;;  %s785_s1 = inlined_call_operand.vmem [shape: f32[256,32], index: 1, kind: input, shape index: {}]   ;;  %s786_s2 = inlined_call_operand.vmem [shape: f32[4,32], index: 2, kind: input, shape index: {}]   ;;  %s787_s3 = inlined_call_operand.vmem [shape: f32[2,4,32], index: 3, kind: output, shape index: {}]  }
   0x1   :  { %s652_s14 = smov 0  }
   0x2 LB: > { %s28_s15 = sadd.s32 1, %s622_s13  ;;  %p505_p0 = scmp.ge.s32.totalorder %s626_s14, 1  ;;  %s626_s14 = sphi %s652_s14, %s13_s14   ;;  %s622_s13 = sphi %s650_s13, %s789_s13   ;;  %s618_s12 = sphi %s648_s12, %s788_s12  }
   0x3   : > { %p30_p1 = scmp.ge.s32.totalorder %s28_s15, 2  ;;  %p189_p2 = scmp.lt.s32.totalorder %s626_s14, 3 }
   0x5   : > { %s791_s15 = smov (%p30_p1, %s28_s15), 0  ;;  %p190_p3 = pnand %p505_p0, %p189_p2 }
   0x6   : > { %v280_v0 = vld [vmem:[%s785_s1 + $0x80] sm:$0xff] (!%p190_p3)  ;;  %v281_v1 = vld [vmem:[%s785_s1 + $0x88] sm:$0xff] (!%p190_p3)  ;;  %p233_p4 = scmp.lt.s32.totalorder (!%p190_p3), %s618_s12, 1  ;;  %v282_v5 = vld [vmem:[%s785_s1 + $0x90] sm:$0xff] (!%p190_p3)  ;;  %vm370_vm0 = vcmask (!%p190_p3), 257024  }
   0x7   : > { %193 = sbr.rel (%p190_p3) target bundleno = 259 (0x103), region = 32  ;;  %v264_v2 = vld [vmem:[%s785_s1] sm:$0xff] (!%p190_p3)  ;;  %v547_v3 = vpack.c.bf16 (!%p190_p3), %v281_v1, %v280_v0  ;;  %v265_v4 = vld [vmem:[%s785_s1 + $0x8] sm:$0xff] (!%p190_p3)  ;;  %v283_v6 = vld [vmem:[%s785_s1 + $0x98] sm:$0xff] (!%p190_p3) }
   0x8   : > { %v549_v7 = vpack.c.bf16 (!%p190_p3), %v265_v4, %v264_v2  ;;  %v551_v8 = vpack.c.bf16 (!%p190_p3), %v283_v6, %v282_v5  ;;  %v266_v9 = vld [vmem:[%s785_s1 + $0x10] sm:$0xff] (!%p190_p3)  ;;  %v267_v10 = vld [vmem:[%s785_s1 + $0x18] sm:$0xff] (!%p190_p3)  ;;  %v284_v11 = vld [vmem:[%s785_s1 + $0xa0] sm:$0xff] (!%p190_p3) }
   0x9   : > { %548 = vmatprep.subr.bf16.mxu0 (!%p190_p3), %v547_v3  ;;  %v285_v12 = vld [vmem:[%s785_s1 + $0xa8] sm:$0xff] (!%p190_p3)  ;;  %v553_v13 = vpack.c.bf16 (!%p190_p3), %v267_v10, %v266_v9  ;;  %v268_v15 = vld [vmem:[%s785_s1 + $0x20] sm:$0xff] (!%p190_p3)  ;;  %v286_v17 = vld [vmem:[%s785_s1 + $0xb0] sm:$0xff] (!%p190_p3) }
   0xa   : > { %550 = vmatpush3.bf16.msra.mxu0 (!%p190_p3), %v549_v7  ;;  %v555_v14 = vpack.c.bf16 (!%p190_p3), %v285_v12, %v284_v11  ;;  %v269_v16 = vld [vmem:[%s785_s1 + $0x28] sm:$0xff] (!%p190_p3)  ;;  %v287_v18 = vld [vmem:[%s785_s1 + $0xb8] sm:$0xff] (!%p190_p3)  ;;  %v270_v21 = vld [vmem:[%s785_s1 + $0x30] sm:$0xff] (!%p190_p3) }
   0xb   : > { %552 = vmatprep.subr.bf16.mxu0 (!%p190_p3), %v551_v8  ;;  %v557_v19 = vpack.c.bf16 (!%p190_p3), %v269_v16, %v268_v15  ;;  %v559_v20 = vpack.c.bf16 (!%p190_p3), %v287_v18, %v286_v17  ;;  %v271_v22 = vld [vmem:[%s785_s1 + $0x38] sm:$0xff] (!%p190_p3)  ;;  %v288_v23 = vld [vmem:[%s785_s1 + $0xc0] sm:$0xff] (!%p190_p3)  ;;  %v289_v24 = vld [vmem:[%s785_s1 + $0xc8] sm:$0xff] (!%p190_p3) }
   0xc   : > { %v561_v27 = vpack.c.bf16 (!%p190_p3), %v271_v22, %v270_v21  ;;  %v563_v28 = vpack.c.bf16 (!%p190_p3), %v289_v24, %v288_v23  ;;  %v272_v29 = vld [vmem:[%s785_s1 + $0x40] sm:$0xff] (!%p190_p3)  ;;  %v273_v30 = vld [vmem:[%s785_s1 + $0x48] sm:$0xff] (!%p190_p3)  ;;  %v290_v31 = vld [vmem:[%s785_s1 + $0xd0] sm:$0xff] (!%p190_p3) }
   0xd   : > { %v291_v32 = vld [vmem:[%s785_s1 + $0xd8] sm:$0xff] (!%p190_p3)  ;;  %v565_v33 = vpack.c.bf16 (!%p190_p3), %v273_v30, %v272_v29  ;;  %v274_v35 = vld [vmem:[%s785_s1 + $0x50] sm:$0xff] (!%p190_p3)  ;;  %v292_v37 = vld [vmem:[%s785_s1 + $0xe0] sm:$0xff] (!%p190_p3) }
   0xe   : > { %s793_s12 = smov (!%p233_p4, %s618_s12), 1  ;;  %554 = vmatpush3.bf16.msra.mxu0 %v553_v13  ;;  %v567_v34 = vpack.c.bf16 %v291_v32, %v290_v31  ;;  %v275_v36 = vld [vmem:[%s785_s1 + $0x58] sm:$0xff]  ;;  %v293_v38 = vld [vmem:[%s785_s1 + $0xe8] sm:$0xff]  ;;  %v276_v41 = vld [vmem:[%s785_s1 + $0x60] sm:$0xff] }
   0xf   : > { %s511_s9 = sshll.u32 %s793_s12, 3  ;;  %556 = vmatprep.subr.bf16.mxu0 %v555_v14  ;;  %v569_v39 = vpack.c.bf16 %v275_v36, %v274_v35  ;;  %v571_v40 = vpack.c.bf16 %v293_v38, %v292_v37  ;;  %v277_v42 = vld [vmem:[%s785_s1 + $0x68] sm:$0xff]  ;;  %v294_v43 = vld [vmem:[%s785_s1 + $0xf0] sm:$0xff]  ;;  %v295_v44 = vld [vmem:[%s785_s1 + $0xf8] sm:$0xff]  ;;  %s508_s11 = sshll.u32 %s793_s12, 2 }
  0x10   : > { %s241_s24 = scalar_lea.vmem %s784_s0, %s511_s9  ;;  %v573_v45 = vpack.c.bf16 %v277_v42, %v276_v41  ;;  %v575_v46 = vpack.c.bf16 %v295_v44, %v294_v43  ;;  %v278_v47 = vld [vmem:[%s785_s1 + $0x70] sm:$0xff]  ;;  %v279_v48 = vld [vmem:[%s785_s1 + $0x78] sm:$0xff]  ;;  %v296_v51 = vld [vmem:[%s786_s2] sm:$0xf]  ;;  %s262_s20 = scalar_lea.vmem %s787_s3, %s508_s11 }
  0x11   : > { %v263_v25 = vld [vmem:[%s241_s24] sm:$0xff]  ;;  %v577_v49 = vpack.c.bf16 %v279_v48, %v278_v47 }
  0x12   : > { %v298_v26 = vcombine.high %v263_v25, %v263_v25  ;;  %558 = vmatpush3.bf16.msra.mxu0 %v557_v19 }
  0x13   : > { %560 = vmatprep.subr.bf16.mxu0 %v559_v20 }
  0x14   : > { %364 = vmatprep.mubr.f32.mxu0 %v298_v26 }
  0x16   : > { %562 = vmatpush3.bf16.msra.mxu0 %v561_v27 }
  0x17   : > { %564 = vmatprep.subr.bf16.mxu0 %v563_v28 }
  0x1a   : > { %566 = vmatpush3.bf16.msra.mxu0 %v565_v33 }
  0x1b   : > { %568 = vmatprep.subr.bf16.mxu0 %v567_v34 }
  0x1e   : > { %570 = vmatpush3.bf16.msra.mxu0 %v569_v39 }
  0x1f   : > { %572 = vmatprep.subr.bf16.mxu0 %v571_v40 }
  0x22   : > { %574 = vmatpush3.bf16.msra.mxu0 %v573_v45 }
  0x23   : > { %576 = vmatprep.subr.bf16.mxu0 %v575_v46 }
  0x26   : > { %578 = vmatpush3.bf16.msra.mxu0 %v577_v49 }
  0x29   : > { %365 = vmatmul.mubr.f32.vlgmr.msra.gmra.mrb[0].mxu0 %v263_v25 }
  0xfc   : > { %v544_v50 = vpop.f32.mrb[0].mxu0 }
  0xfd   : > { %v545_v52 = vpop.f32.mrb[1].mxu0 }
  0xfe   : > { %v546_v53 = vadd.f32 %v545_v52, %v544_v50 }
 0x100   : > { %v367_v54 = vadd.f32 %v546_v53, %v296_v51 }
 0x102   : > { %371 = vst.msk [vmem:[%s262_s20] sm:$0xf] %vm370_vm0, %v367_v54 }
 0x103 PF: > { %s13_s14 = sadd.s32 1, %s626_s14   ;;  %s788_s12 = smov %s622_s13 }
 0x104   : > { %p10_p5 = scmp.ge.s32.totalorder %s13_s14, 4   ;;  %s789_s13 = smov %s791_s15 }
 0x106   :  { %12 = sbr.rel (!%p10_p5) target bundleno = 2 (0x2), region = 68 }

</bundles_post_ra>
